<compile_context>
chip_gen: v7x
topology: tpu7x:2x2x1
jax: 0.10.0
libtpu: 0.0.40
codegen_flags: <defaults>
</compile_context>

<pallas_src>
import functools

import jax
import jax.numpy as jnp
from jax.experimental import pallas as pl
from jax.experimental.pallas import tpu as pltpu

_LANE = 128
_SUBLANE = 8


def _round_up(v, m):
    return ((v + m - 1) // m) * m


def _gelu_exact(x):
    # PyTorch nn.GELU() default: 0.5 * x * (1 + erf(x / sqrt(2)))
    return 0.5 * x * (1.0 + jax.lax.erf(x * (1.0 / jnp.sqrt(2.0)).astype(x.dtype)))


def _resnet_kernel(n_layers, pack,
                   x_ref,
                   w1_ref, b1_ref,      # body: Linear(n_input -> bottleneck)
                   wr_ref, br_ref,      # shared ResBlock weight (block-diag if packed)
                   w2_ref, b2_ref,      # body: Linear(bottleneck -> n_output)
                   w3_ref, b3_ref,      # final: Linear(n_output -> n_output)
                   w4_ref, b4_ref,      # final: Linear(n_output -> n_output)
                   body_out_ref, final_out_ref):
    x = x_ref[...]                                            # (tb, n_input)

    # body: Linear -> GELU.  Bias added at point of use ((1, n) sublane
    # broadcast on the VPU); no materialized (tb, n) temporaries.
    h = _gelu_exact(
        jnp.dot(x, w1_ref[...], preferred_element_type=jnp.float32) + b1_ref[...])
    tb, nb = h.shape

    wr = wr_ref[...]   # hoisted; VMEM-resident across the loop
    br = br_ref[...]   # (1, nb) or (1, 2*nb) if packed

    # Lane-pack the residual loop: pack rows (i, i + tb/2) into one 128-lane row
    # so the 64-wide hidden fills every vreg lane; the matmul uses the
    # block-diagonal diag(wr, wr) weight built in the wrapper.  Bit-exact.
    if pack:
        half = tb // 2
        hcur = jnp.concatenate([h[:half, :], h[half:, :]], axis=1)   # (tb/2, 2nb)
    else:
        hcur = h

    def res_step(hh):
        r = jnp.dot(hh, wr, preferred_element_type=jnp.float32) + br
        return hh + _gelu_exact(r)

    if n_layers <= 4:
        for _ in range(n_layers):
            hcur = res_step(hcur)
    else:
        # Partial unroll: scheduler visibility without blowing up code size /
        # vreg live ranges for deep stacks.
        hcur = jax.lax.fori_loop(0, n_layers, lambda _, v: res_step(v), hcur,
                                 unroll=2)

    if pack:
        h = jnp.concatenate([hcur[:, :nb], hcur[:, nb:]], axis=0)    # (tb, nb)
    else:
        h = hcur

    # body: final Linear(bottleneck -> n_output)
    y = jnp.dot(h, w2_ref[...], preferred_element_type=jnp.float32) + b2_ref[...]
    body_out_ref[...] = y.astype(body_out_ref.dtype)

    # final head: Linear -> GELU -> Linear, applied to the SAME body output.
    z = _gelu_exact(
        jnp.dot(y, w3_ref[...], preferred_element_type=jnp.float32) + b3_ref[...])
    z = jnp.dot(z, w4_ref[...], preferred_element_type=jnp.float32) + b4_ref[...]
    final_out_ref[...] = z.astype(final_out_ref.dtype)


def extended_resnet_forward(x, params, *, n_layers, batch_tile=None):
    """x: (B, n_input) float32. params: dict of (in, out) weights and (1, out) biases."""
    B, n_input = x.shape
    bottleneck = params["w1"].shape[1]
    n_output = params["w2"].shape[1]

    # ---- batch tiling ----------------------------------------------------
    if batch_tile is None:
        batch_tile = 1024                     # sweepable; VMEM per tile is tiny
    tb = _round_up(min(batch_tile, _round_up(B, _SUBLANE)), _SUBLANE)
    # v7x: make sure the batch grid has >= 2 tiles when the batch allows so
    # both TensorCores get work under dimension_semantics=("parallel",).
    tb = min(tb, max(_SUBLANE, _round_up(pl.cdiv(B, 2), _SUBLANE)))
    b_pad = _round_up(B, tb)
    num_tiles = b_pad // tb

    # HBM-side arrays keep their natural narrow widths (blocks equal the full
    # last dim).  Only the batch dimension is zero-padded; padded rows produce
    # garbage that is sliced off before return.
    x_p = jnp.pad(x, ((0, b_pad - B), (0, 0)))

    # ---- residual-loop lane packing (exact) --------------------------------
    pack = (2 * bottleneck <= _LANE) and (n_layers >= 1) and (tb % 2 == 0)
    if pack:
        zeros = jnp.zeros((bottleneck, bottleneck), jnp.float32)
        wr_k = jnp.block([[params["wr"], zeros], [zeros, params["wr"]]])
        br_k = jnp.concatenate([params["br"], params["br"]], axis=1)
    else:
        wr_k, br_k = params["wr"], params["br"]

    const = lambda i: (0, 0)          # weights/biases: VMEM-resident
    tiled = lambda i: (i, 0)          # activations: batch-tiled

    in_specs = [
        pl.BlockSpec((tb, n_input), tiled),
        pl.BlockSpec(params["w1"].shape, const), pl.BlockSpec(params["b1"].shape, const),
        pl.BlockSpec(wr_k.shape, const),         pl.BlockSpec(br_k.shape, const),
        pl.BlockSpec(params["w2"].shape, const), pl.BlockSpec(params["b2"].shape, const),
        pl.BlockSpec(params["w3"].shape, const), pl.BlockSpec(params["b3"].shape, const),
        pl.BlockSpec(params["w4"].shape, const), pl.BlockSpec(params["b4"].shape, const),
    ]
    out_specs = (pl.BlockSpec((tb, n_output), tiled),
                 pl.BlockSpec((tb, n_output), tiled))

    flops = 2 * b_pad * (n_input * bottleneck + n_layers * bottleneck * bottleneck
                         + bottleneck * n_output + 2 * n_output * n_output)
    bytes_accessed = 4 * (b_pad * n_input + 2 * b_pad * n_output
                          + n_input * bottleneck + bottleneck * bottleneck
                          + bottleneck * n_output + 2 * n_output * n_output
                          + 2 * bottleneck + 3 * n_output)

    body_out_p, final_out_p = pl.pallas_call(
        functools.partial(_resnet_kernel, n_layers, pack),
        grid=(num_tiles,),
        in_specs=in_specs,
        out_specs=out_specs,
        out_shape=(jax.ShapeDtypeStruct((b_pad, n_output), jnp.float32),
                   jax.ShapeDtypeStruct((b_pad, n_output), jnp.float32)),
        compiler_params=pltpu.CompilerParams(
            dimension_semantics=("parallel",)),
        # Exact erf lowers to a VPU polynomial, not an EUP op -> transcendentals=0.
        cost_estimate=pl.CostEstimate(flops=flops, transcendentals=0,
                                      bytes_accessed=bytes_accessed),
    )(x_p, params["w1"], params["b1"], wr_k, br_k,
      params["w2"], params["b2"], params["w3"], params["b3"],
      params["w4"], params["b4"])

    return body_out_p[:B], final_out_p[:B]


def init_params(key, n_input, n_output, bottleneck):
    """Deterministic synthetic init. Weights stored as (in, out); biases as (1, out)."""
    ks = jax.random.split(key, 10)
    s = 0.1

    def w(k, i, o):
        return jax.random.normal(k, (i, o), jnp.float32) * s

    def b(k, o):
        return jax.random.normal(k, (1, o), jnp.float32) * s

    return {
        "w1": w(ks[0], n_input, bottleneck),    "b1": b(ks[1], bottleneck),
        "wr": w(ks[2], bottleneck, bottleneck), "br": b(ks[3], bottleneck),
        "w2": w(ks[4], bottleneck, n_output),   "b2": b(ks[5], n_output),
        "w3": w(ks[6], n_output, n_output),     "b3": b(ks[7], n_output),
        "w4": w(ks[8], n_output, n_output),     "b4": b(ks[9], n_output),
    }


def _reference_forward(x, p, n_layers):
    """Pure-JAX reference for correctness check."""
    gelu = lambda v: jax.nn.gelu(v, approximate=False)
    h = gelu(x @ p["w1"] + p["b1"])
    for _ in range(n_layers):
        h = h + gelu(h @ p["wr"] + p["br"])
    y = h @ p["w2"] + p["b2"]
    z = gelu(y @ p["w3"] + p["b3"]) @ p["w4"] + p["b4"]
    return y, z


if __name__ == "__main__":
    # Small shapes consistent with the module's __init__ defaults.
    B, N_INPUT, BOTTLENECK, N_OUTPUT, N_LAYERS = 8, 32, 64, 16, 2

    key = jax.random.PRNGKey(0)
    k_x, k_p = jax.random.split(key)
    x = jax.random.normal(k_x, (B, N_INPUT), jnp.float32)
    params = init_params(k_p, N_INPUT, N_OUTPUT, BOTTLENECK)

    body_out, final_out = extended_resnet_forward(x, params, n_layers=N_LAYERS)
    jax.block_until_ready((body_out, final_out))

    # Sanity check against pure JAX reference (f32 + exact GELU -> tight tol).
    ref_body, ref_final = _reference_forward(x, params, N_LAYERS)
    assert body_out.shape == (B, N_OUTPUT) and final_out.shape == (B, N_OUTPUT)
    assert jnp.allclose(body_out, ref_body, atol=1e-5, rtol=1e-5)
    assert jnp.allclose(final_out, ref_final, atol=1e-5, rtol=1e-5)

    print("KERNEL_OK")
</pallas_src>

<mosaic_0001>
module attributes {stable_mosaic.version = 11 : i64} {
  func.func @_resnet_kernel(%arg0: i32, %arg1: memref<8x32xf32, #tpu.memory_space<vmem>>, %arg2: memref<32x64xf32, #tpu.memory_space<vmem>>, %arg3: memref<1x64xf32, #tpu.memory_space<vmem>>, %arg4: memref<128x128xf32, #tpu.memory_space<vmem>>, %arg5: memref<1x128xf32, #tpu.memory_space<vmem>>, %arg6: memref<64x16xf32, #tpu.memory_space<vmem>>, %arg7: memref<1x16xf32, #tpu.memory_space<vmem>>, %arg8: memref<16x16xf32, #tpu.memory_space<vmem>>, %arg9: memref<1x16xf32, #tpu.memory_space<vmem>>, %arg10: memref<16x16xf32, #tpu.memory_space<vmem>>, %arg11: memref<1x16xf32, #tpu.memory_space<vmem>>, %arg12: memref<8x16xf32, #tpu.memory_space<vmem>>, %arg13: memref<8x16xf32, #tpu.memory_space<vmem>>) attributes {dimension_semantics = [#tpu.dimension_semantics<parallel>], iteration_bounds = array<i64: 1>, scalar_prefetch = 0 : i64, scratch_operands = 0 : i64, tpu.core_type = #tpu.core_type<tc>, window_params = [{transform_indices = @transform_0, window_bounds = array<i64: 8, 32>}, {pipeline_mode = #tpu.pipeline_mode<synchronous>, transform_indices = @transform_1, window_bounds = array<i64: 32, 64>}, {pipeline_mode = #tpu.pipeline_mode<synchronous>, transform_indices = @transform_2, window_bounds = array<i64: 1, 64>}, {pipeline_mode = #tpu.pipeline_mode<synchronous>, transform_indices = @transform_3, window_bounds = array<i64: 128, 128>}, {pipeline_mode = #tpu.pipeline_mode<synchronous>, transform_indices = @transform_4, window_bounds = array<i64: 1, 128>}, {pipeline_mode = #tpu.pipeline_mode<synchronous>, transform_indices = @transform_5, window_bounds = array<i64: 64, 16>}, {pipeline_mode = #tpu.pipeline_mode<synchronous>, transform_indices = @transform_6, window_bounds = array<i64: 1, 16>}, {pipeline_mode = #tpu.pipeline_mode<synchronous>, transform_indices = @transform_7, window_bounds = array<i64: 16, 16>}, {pipeline_mode = #tpu.pipeline_mode<synchronous>, transform_indices = @transform_8, window_bounds = array<i64: 1, 16>}, {pipeline_mode = #tpu.pipeline_mode<synchronous>, transform_indices = @transform_9, window_bounds = array<i64: 16, 16>}, {pipeline_mode = #tpu.pipeline_mode<synchronous>, transform_indices = @transform_10, window_bounds = array<i64: 1, 16>}, {transform_indices = @transform_11, window_bounds = array<i64: 8, 16>}, {transform_indices = @transform_12, window_bounds = array<i64: 8, 16>}]} {
    %c0 = arith.constant 0 : index
    %c0_0 = arith.constant 0 : index
    %0 = vector.load %arg1[%c0, %c0_0] : memref<8x32xf32, #tpu.memory_space<vmem>>, vector<8x32xf32>
    %c0_1 = arith.constant 0 : index
    %c0_2 = arith.constant 0 : index
    %1 = vector.load %arg2[%c0_1, %c0_2] : memref<32x64xf32, #tpu.memory_space<vmem>>, vector<32x64xf32>
    %cst = arith.constant dense<0.000000e+00> : vector<8x64xf32>
    %2 = tpu.matmul %0, %1, %cst {dimension_numbers = #tpu.dot_dimension_numbers<[1], [0], [0], [1], [0, 0, 1, 1], [], []>} : vector<8x32xf32>, vector<32x64xf32>, vector<8x64xf32> -> vector<8x64xf32>
    %c0_3 = arith.constant 0 : index
    %c0_4 = arith.constant 0 : index
    %3 = vector.load %arg3[%c0_3, %c0_4] : memref<1x64xf32, #tpu.memory_space<vmem>>, vector<1x64xf32>
    %4 = vector.broadcast %3 : vector<1x64xf32> to vector<8x64xf32>
    %5 = arith.addf %2, %4 : vector<8x64xf32>
    %cst_5 = arith.constant 5.000000e-01 : f32
    %6 = vector.broadcast %cst_5 : f32 to vector<8x64xf32>
    %7 = arith.mulf %6, %5 : vector<8x64xf32>
    %cst_6 = arith.constant 2.000000e+00 : f32
    %8 = math.sqrt %cst_6 : f32
    %cst_7 = arith.constant 1.000000e+00 : f32
    %9 = arith.divf %cst_7, %8 : f32
    %10 = vector.broadcast %9 : f32 to vector<8x64xf32>
    %11 = arith.mulf %5, %10 : vector<8x64xf32>
    %12 = math.erf %11 : vector<8x64xf32>
    %cst_8 = arith.constant 1.000000e+00 : f32
    %13 = vector.broadcast %cst_8 : f32 to vector<8x64xf32>
    %14 = arith.addf %13, %12 : vector<8x64xf32>
    %15 = arith.mulf %7, %14 : vector<8x64xf32>
    %c0_9 = arith.constant 0 : index
    %c0_10 = arith.constant 0 : index
    %16 = vector.load %arg4[%c0_9, %c0_10] : memref<128x128xf32, #tpu.memory_space<vmem>>, vector<128x128xf32>
    %c0_11 = arith.constant 0 : index
    %c0_12 = arith.constant 0 : index
    %17 = vector.load %arg5[%c0_11, %c0_12] : memref<1x128xf32, #tpu.memory_space<vmem>>, vector<1x128xf32>
    %18 = vector.extract_strided_slice %15 {offsets = [0, 0], sizes = [4, 64], strides = [1, 1]} : vector<8x64xf32> to vector<4x64xf32>
    %19 = vector.extract_strided_slice %15 {offsets = [4, 0], sizes = [4, 64], strides = [1, 1]} : vector<8x64xf32> to vector<4x64xf32>
    %20 = tpu.concatenate %18, %19 in 1 : vector<4x64xf32>, vector<4x64xf32> -> vector<4x128xf32>
    %cst_13 = arith.constant dense<0.000000e+00> : vector<4x128xf32>
    %21 = tpu.matmul %20, %16, %cst_13 {dimension_numbers = #tpu.dot_dimension_numbers<[1], [0], [0], [1], [0, 0, 1, 1], [], []>} : vector<4x128xf32>, vector<128x128xf32>, vector<4x128xf32> -> vector<4x128xf32>
    %22 = vector.broadcast %17 : vector<1x128xf32> to vector<4x128xf32>
    %23 = arith.addf %21, %22 : vector<4x128xf32>
    %cst_14 = arith.constant 5.000000e-01 : f32
    %24 = vector.broadcast %cst_14 : f32 to vector<4x128xf32>
    %25 = arith.mulf %24, %23 : vector<4x128xf32>
    %cst_15 = arith.constant 2.000000e+00 : f32
    %26 = math.sqrt %cst_15 : f32
    %cst_16 = arith.constant 1.000000e+00 : f32
    %27 = arith.divf %cst_16, %26 : f32
    %28 = vector.broadcast %27 : f32 to vector<4x128xf32>
    %29 = arith.mulf %23, %28 : vector<4x128xf32>
    %30 = math.erf %29 : vector<4x128xf32>
    %cst_17 = arith.constant 1.000000e+00 : f32
    %31 = vector.broadcast %cst_17 : f32 to vector<4x128xf32>
    %32 = arith.addf %31, %30 : vector<4x128xf32>
    %33 = arith.mulf %25, %32 : vector<4x128xf32>
    %34 = arith.addf %20, %33 : vector<4x128xf32>
    %cst_18 = arith.constant dense<0.000000e+00> : vector<4x128xf32>
    %35 = tpu.matmul %34, %16, %cst_18 {dimension_numbers = #tpu.dot_dimension_numbers<[1], [0], [0], [1], [0, 0, 1, 1], [], []>} : vector<4x128xf32>, vector<128x128xf32>, vector<4x128xf32> -> vector<4x128xf32>
    %36 = vector.broadcast %17 : vector<1x128xf32> to vector<4x128xf32>
    %37 = arith.addf %35, %36 : vector<4x128xf32>
    %cst_19 = arith.constant 5.000000e-01 : f32
    %38 = vector.broadcast %cst_19 : f32 to vector<4x128xf32>
    %39 = arith.mulf %38, %37 : vector<4x128xf32>
    %cst_20 = arith.constant 2.000000e+00 : f32
    %40 = math.sqrt %cst_20 : f32
    %cst_21 = arith.constant 1.000000e+00 : f32
    %41 = arith.divf %cst_21, %40 : f32
    %42 = vector.broadcast %41 : f32 to vector<4x128xf32>
    %43 = arith.mulf %37, %42 : vector<4x128xf32>
    %44 = math.erf %43 : vector<4x128xf32>
    %cst_22 = arith.constant 1.000000e+00 : f32
    %45 = vector.broadcast %cst_22 : f32 to vector<4x128xf32>
    %46 = arith.addf %45, %44 : vector<4x128xf32>
    %47 = arith.mulf %39, %46 : vector<4x128xf32>
    %48 = arith.addf %34, %47 : vector<4x128xf32>
    %49 = vector.extract_strided_slice %48 {offsets = [0, 0], sizes = [4, 64], strides = [1, 1]} : vector<4x128xf32> to vector<4x64xf32>
    %50 = vector.extract_strided_slice %48 {offsets = [0, 64], sizes = [4, 64], strides = [1, 1]} : vector<4x128xf32> to vector<4x64xf32>
    %51 = tpu.concatenate %49, %50 in 0 : vector<4x64xf32>, vector<4x64xf32> -> vector<8x64xf32>
    %c0_23 = arith.constant 0 : index
    %c0_24 = arith.constant 0 : index
    %52 = vector.load %arg6[%c0_23, %c0_24] : memref<64x16xf32, #tpu.memory_space<vmem>>, vector<64x16xf32>
    %cst_25 = arith.constant dense<0.000000e+00> : vector<8x16xf32>
    %53 = tpu.matmul %51, %52, %cst_25 {dimension_numbers = #tpu.dot_dimension_numbers<[1], [0], [0], [1], [0, 0, 1, 1], [], []>} : vector<8x64xf32>, vector<64x16xf32>, vector<8x16xf32> -> vector<8x16xf32>
    %c0_26 = arith.constant 0 : index
    %c0_27 = arith.constant 0 : index
    %54 = vector.load %arg7[%c0_26, %c0_27] : memref<1x16xf32, #tpu.memory_space<vmem>>, vector<1x16xf32>
    %55 = vector.broadcast %54 : vector<1x16xf32> to vector<8x16xf32>
    %56 = arith.addf %53, %55 : vector<8x16xf32>
    %c0_28 = arith.constant 0 : index
    %c0_29 = arith.constant 0 : index
    %57 = vector.load %arg12[%c0_28, %c0_29] : memref<8x16xf32, #tpu.memory_space<vmem>>, vector<8x16xf32>
    tpu.vector_store %arg12[%c0_28, %c0_29], %56 {strides = array<i32>} : memref<8x16xf32, #tpu.memory_space<vmem>>, vector<8x16xf32>,
    %c0_30 = arith.constant 0 : index
    %c0_31 = arith.constant 0 : index
    %58 = vector.load %arg8[%c0_30, %c0_31] : memref<16x16xf32, #tpu.memory_space<vmem>>, vector<16x16xf32>
    %cst_32 = arith.constant dense<0.000000e+00> : vector<8x16xf32>
    %59 = tpu.matmul %56, %58, %cst_32 {dimension_numbers = #tpu.dot_dimension_numbers<[1], [0], [0], [1], [0, 0, 1, 1], [], []>} : vector<8x16xf32>, vector<16x16xf32>, vector<8x16xf32> -> vector<8x16xf32>
    %c0_33 = arith.constant 0 : index
    %c0_34 = arith.constant 0 : index
    %60 = vector.load %arg9[%c0_33, %c0_34] : memref<1x16xf32, #tpu.memory_space<vmem>>, vector<1x16xf32>
    %61 = vector.broadcast %60 : vector<1x16xf32> to vector<8x16xf32>
    %62 = arith.addf %59, %61 : vector<8x16xf32>
    %cst_35 = arith.constant 5.000000e-01 : f32
    %63 = vector.broadcast %cst_35 : f32 to vector<8x16xf32>
    %64 = arith.mulf %63, %62 : vector<8x16xf32>
    %cst_36 = arith.constant 2.000000e+00 : f32
    %65 = math.sqrt %cst_36 : f32
    %cst_37 = arith.constant 1.000000e+00 : f32
    %66 = arith.divf %cst_37, %65 : f32
    %67 = vector.broadcast %66 : f32 to vector<8x16xf32>
    %68 = arith.mulf %62, %67 : vector<8x16xf32>
    %69 = math.erf %68 : vector<8x16xf32>
    %cst_38 = arith.constant 1.000000e+00 : f32
    %70 = vector.broadcast %cst_38 : f32 to vector<8x16xf32>
    %71 = arith.addf %70, %69 : vector<8x16xf32>
    %72 = arith.mulf %64, %71 : vector<8x16xf32>
    %c0_39 = arith.constant 0 : index
    %c0_40 = arith.constant 0 : index
    %73 = vector.load %arg10[%c0_39, %c0_40] : memref<16x16xf32, #tpu.memory_space<vmem>>, vector<16x16xf32>
    %cst_41 = arith.constant dense<0.000000e+00> : vector<8x16xf32>
    %74 = tpu.matmul %72, %73, %cst_41 {dimension_numbers = #tpu.dot_dimension_numbers<[1], [0], [0], [1], [0, 0, 1, 1], [], []>} : vector<8x16xf32>, vector<16x16xf32>, vector<8x16xf32> -> vector<8x16xf32>
    %c0_42 = arith.constant 0 : index
    %c0_43 = arith.constant 0 : index
    %75 = vector.load %arg11[%c0_42, %c0_43] : memref<1x16xf32, #tpu.memory_space<vmem>>, vector<1x16xf32>
    %76 = vector.broadcast %75 : vector<1x16xf32> to vector<8x16xf32>
    %77 = arith.addf %74, %76 : vector<8x16xf32>
    %c0_44 = arith.constant 0 : index
    %c0_45 = arith.constant 0 : index
    %78 = vector.load %arg13[%c0_44, %c0_45] : memref<8x16xf32, #tpu.memory_space<vmem>>, vector<8x16xf32>
    tpu.vector_store %arg13[%c0_44, %c0_45], %77 {strides = array<i32>} : memref<8x16xf32, #tpu.memory_space<vmem>>, vector<8x16xf32>,
    return
  }
  func.func @transform_0(%arg0: i32) -> (i32, i32) {
    %c0_i32 = arith.constant 0 : i32
    %c0_i32_0 = arith.constant 0 : i32
    return %arg0, %c0_i32 : i32, i32
  }
  func.func @transform_1(%arg0: i32) -> (i32, i32) {
    %c0_i32 = arith.constant 0 : i32
    %c0_i32_0 = arith.constant 0 : i32
    %c0_i32_1 = arith.constant 0 : i32
    return %c0_i32, %c0_i32_0 : i32, i32
  }
  func.func @transform_2(%arg0: i32) -> (i32, i32) {
    %c0_i32 = arith.constant 0 : i32
    %c0_i32_0 = arith.constant 0 : i32
    %c0_i32_1 = arith.constant 0 : i32
    return %c0_i32, %c0_i32_0 : i32, i32
  }
  func.func @transform_3(%arg0: i32) -> (i32, i32) {
    %c0_i32 = arith.constant 0 : i32
    %c0_i32_0 = arith.constant 0 : i32
    %c0_i32_1 = arith.constant 0 : i32
    return %c0_i32, %c0_i32_0 : i32, i32
  }
  func.func @transform_4(%arg0: i32) -> (i32, i32) {
    %c0_i32 = arith.constant 0 : i32
    %c0_i32_0 = arith.constant 0 : i32
    %c0_i32_1 = arith.constant 0 : i32
    return %c0_i32, %c0_i32_0 : i32, i32
  }
  func.func @transform_5(%arg0: i32) -> (i32, i32) {
    %c0_i32 = arith.constant 0 : i32
    %c0_i32_0 = arith.constant 0 : i32
    %c0_i32_1 = arith.constant 0 : i32
    return %c0_i32, %c0_i32_0 : i32, i32
  }
  func.func @transform_6(%arg0: i32) -> (i32, i32) {
    %c0_i32 = arith.constant 0 : i32
    %c0_i32_0 = arith.constant 0 : i32
    %c0_i32_1 = arith.constant 0 : i32
    return %c0_i32, %c0_i32_0 : i32, i32
  }
  func.func @transform_7(%arg0: i32) -> (i32, i32) {
    %c0_i32 = arith.constant 0 : i32
    %c0_i32_0 = arith.constant 0 : i32
    %c0_i32_1 = arith.constant 0 : i32
    return %c0_i32, %c0_i32_0 : i32, i32
  }
  func.func @transform_8(%arg0: i32) -> (i32, i32) {
    %c0_i32 = arith.constant 0 : i32
    %c0_i32_0 = arith.constant 0 : i32
    %c0_i32_1 = arith.constant 0 : i32
    return %c0_i32, %c0_i32_0 : i32, i32
  }
  func.func @transform_9(%arg0: i32) -> (i32, i32) {
    %c0_i32 = arith.constant 0 : i32
    %c0_i32_0 = arith.constant 0 : i32
    %c0_i32_1 = arith.constant 0 : i32
    return %c0_i32, %c0_i32_0 : i32, i32
  }
  func.func @transform_10(%arg0: i32) -> (i32, i32) {
    %c0_i32 = arith.constant 0 : i32
    %c0_i32_0 = arith.constant 0 : i32
    %c0_i32_1 = arith.constant 0 : i32
    return %c0_i32, %c0_i32_0 : i32, i32
  }
  func.func @transform_11(%arg0: i32) -> (i32, i32) {
    %c0_i32 = arith.constant 0 : i32
    %c0_i32_0 = arith.constant 0 : i32
    return %arg0, %c0_i32 : i32, i32
  }
  func.func @transform_12(%arg0: i32) -> (i32, i32) {
    %c0_i32 = arith.constant 0 : i32
    %c0_i32_0 = arith.constant 0 : i32
    return %arg0, %c0_i32 : i32, i32
  }
}

</mosaic_0001>

<bundles_post_ra>
// kernel: tpu_custom_call.1
= control target key start
LH: loop header
LB: loop body
LE: loop exit
PB: predicated region body
PF: predicated region fallthrough
CT: control target
= control target key end

     0   :  { %18 = vsyncpa [#allocation3], 0  ;;  %s1183_s0 = inlined_call_operand.vmem [shape: f32[8,32], index: 0, kind: input, shape index: {}]   ;;  %s1184_s1 = inlined_call_operand.vmem [shape: f32[32,64], index: 1, kind: input, shape index: {}]   ;;  %s1185_s2 = inlined_call_operand.vmem [shape: f32[1,64], index: 2, kind: input, shape index: {}]   ;;  %s1186_s3 = inlined_call_operand.hbm [shape: f32[128,128], index: 3, kind: input, shape index: {}]   ;;  %s1187_s4 = inlined_call_operand.vmem [shape: f32[1,128], index: 4, kind: input, shape index: {}]   ;;  %s1188_s5 = inlined_call_operand.vmem [shape: f32[64,16], index: 5, kind: input, shape index: {}]   ;;  %s1189_s6 = inlined_call_operand.vmem [shape: f32[1,16], index: 6, kind: input, shape index: {}]   ;;  %s1190_s7 = inlined_call_operand.vmem [shape: f32[16,16], index: 7, kind: input, shape index: {}]   ;;  %s1191_s8 = inlined_call_operand.vmem [shape: f32[1,16], index: 8, kind: input, shape index: {}]   ;;  %s1192_s9 = inlined_call_operand.vmem [shape: f32[16,16], index: 9, kind: input, shape index: {}]   ;;  %s1193_s10 = inlined_call_operand.vmem [shape: f32[1,16], index: 10, kind: input, shape index: {}]   ;;  %s1194_s11 = inlined_call_operand.hbm [shape: f32[8,16], index: 11, kind: output, shape index: {0}]   ;;  %s1195_s12 = inlined_call_operand.hbm [shape: f32[8,16], index: 12, kind: output, shape index: {1}]  }
   0x1   :  { %19 = vsyncpa [#allocation4], 0 }
   0x2   :  { %20 = vsyncpa [#allocation7], 0  ;;  %s963_s21 = smov [#allocation2]   ;;  %s891_s25 = scalar_lea.hbm %s1186_s3, 2048 }
   0x3   :  { %s32_s22 = sshll.u32 %s963_s21, 4  ;;  %p892_p0 = scmp.ne.s32.totalorder %s1186_s3, %s891_s25  ;;  %s33_s22 = int_to_ptr.vmem [resolvable:$true] %s32_s22 }
   0x4   :  { %p895_p1 = scmp.lt.u32.totalorder %s891_s25, %s1186_s3 }
   0x6   :  { %p897_p2 = pnand %p895_p1, %p892_p0 }
   0x8   :  { %900 = shalt.err (!%p897_p2)
}
   0x9   :  { %s901_s30 = scalar_lea.vmem %s33_s22, 2048  ;;  %p906_p4 = scmp.lt.s32.totalorder %s33_s22, %s33_s22 }
   0xa   :  { %p902_p3 = scmp.ne.s32.totalorder %s33_s22, %s901_s30  ;;  %p907_p5 = scmp.lt.s32.totalorder %s901_s30, %s901_s30 }
   0xc   :  { %p908_p6 = por %p907_p5, %p906_p4 }
   0xe   :  { %p909_p7 = pnand %p908_p6, %p902_p3 }
  0x10   :  { %912 = shalt.err (!%p909_p7)
}
  0x11   :  { %s964_s13 = smov 128   ;;  %s965_s14 = smov 8  }
  0x12   :  { %38 = dma.hbm_to_vmem [thread:$0]  %s1186_s3, 2048, %s33_s22, [#allocation3], %s964_s13, %s964_s13, %s965_s14  }
  0x13   :  { %957 = dma.done.wait [#allocation3], 2048  }
  0x14   :  { %958 = vsyncadd [#allocation3], 4294965248  ;;  %v966_v0 = vmov 0.0|0.0   ;;  %vm967_vm0 = vmmov 0   ;;  %v968_v1 = vmov 0.0   ;;  %v57_v2 = vld [vmem:[%s1184_s1] sm:$0xff] }
  0x15   :  { %802 = vmatprep.subr.bf16.mxu0 %v966_v0  ;;  %696 = vmatprep.mubr.msk.f32.mxu0 %vm967_vm0, %v968_v1  ;;  %v58_v3 = vld [vmem:[%s1184_s1 + $0x8] sm:$0xff]  ;;  %v59_v4 = vld [vmem:[%s1184_s1 + $0x10] sm:$0xff]  ;;  %v60_v6 = vld [vmem:[%s1184_s1 + $0x18] sm:$0xff]  ;;  %vm68_vm1 = vcmask 261120   ;;  %s969_s26 = smov 64   ;;  %vm169_vm2 = vcmask 523264  }
  0x16   :  { %808 = vmatprep.subr.bf16.mxu1 %v966_v0  ;;  %731 = vmatprep.mubr.msk.f32.mxu1 %vm967_vm0, %v968_v1  ;;  %v803_v5 = vpack.c.bf16 %v58_v3, %v57_v2  ;;  %v806_v7 = vpack.c.bf16 %v60_v6, %v59_v4  ;;  %v56_v8 = vld [vmem:[%s1183_s0] sm:$0xff]  ;;  %v148_v10 = vld [vmem:[#allocation2 + $0x8] sm:$0xff]  ;;  %v149_v11 = vld [vmem:[#allocation2 + $0x10] sm:$0xff]  ;;  %vm334_vm3 = vcmask 1043456   ;;  %vm424_vm4 = vcmask 130048   ;;  %s970_s30 = smov [#allocation5]  }
  0x17   :  { %v147_v9 = vld [vmem:[#allocation2] sm:$0xff]  ;;  %v150_v13 = vld [vmem:[#allocation2 + $0x18] sm:$0xff]  ;;  %v152_v16 = vld [vmem:[#allocation2 + $0x28] sm:$0xff] }
  0x18   :  { %804 = vmatpush3.bf16.msra.mxu0 %v803_v5  ;;  %v809_v12 = vpack.c.bf16 %v148_v10, %v147_v9  ;;  %v812_v14 = vpack.c.bf16 %v150_v13, %v149_v11  ;;  %v151_v15 = vld [vmem:[#allocation2 + $0x20] sm:$0xff]  ;;  %v153_v18 = vld [vmem:[#allocation2 + $0x30] sm:$0xff]  ;;  %v154_v19 = vld [vmem:[#allocation2 + $0x38] sm:$0xff] }
  0x19   :  { %805 = vmatprep.subr.bf16.mxu0 %v966_v0  ;;  %v815_v17 = vpack.c.bf16 %v152_v16, %v151_v15  ;;  %v818_v20 = vpack.c.bf16 %v154_v19, %v153_v18  ;;  %v155_v21 = vld [vmem:[#allocation2 + $0x40] sm:$0xff]  ;;  %v156_v22 = vld [vmem:[#allocation2 + $0x48] sm:$0xff]  ;;  %v157_v24 = vld [vmem:[#allocation2 + $0x50] sm:$0xff] }
  0x1a   :  { %810 = vmatpush3.bf16.msra.mxu1 %v809_v12  ;;  %v821_v23 = vpack.c.bf16 %v156_v22, %v155_v21  ;;  %v158_v25 = vld [vmem:[#allocation2 + $0x58] sm:$0xff]  ;;  %v159_v27 = vld [vmem:[#allocation2 + $0x60] sm:$0xff]  ;;  %v160_v28 = vld [vmem:[#allocation2 + $0x68] sm:$0xff] }
  0x1b   :  { %811 = vmatprep.subr.bf16.mxu1 %v966_v0  ;;  %v824_v26 = vpack.c.bf16 %v158_v25, %v157_v24  ;;  %v827_v29 = vpack.c.bf16 %v160_v28, %v159_v27  ;;  %v161_v30 = vld [vmem:[#allocation2 + $0x70] sm:$0xff]  ;;  %v162_v31 = vld [vmem:[#allocation2 + $0x78] sm:$0xff]  ;;  %v625_v33 = vld [vmem:[%s1185_s2] ss:$0 sm:$0xff] }
  0x1c   :  { %807 = vmatpush3.bf16.msra.mxu0 %v806_v7  ;;  %v830_v32 = vpack.c.bf16 %v162_v31, %v161_v30  ;;  %v627_v45 = vld [vmem:[%s1187_s4] ss:$0 sm:$0xff]  ;;  %v337_v56 = vld [vmem:[%s1188_s5 + $0x8] sm:$0xff]  ;;  %v338_v57 = vld [vmem:[%s1188_s5 + $0x10] sm:$0xff]  ;;  %s602_s4 = sshll.u32 %s970_s30, 4  ;;  %s603_s4 = int_to_ptr.vmem [resolvable:$true] %s602_s4 }
  0x1d   :  { %832 = vmatprep.subr.bf16.mxu0 %v966_v0  ;;  %v336_v55 = vld [vmem:[%s1188_s5] sm:$0xff]  ;;  %v339_v59 = vld [vmem:[%s1188_s5 + $0x18] sm:$0xff]  ;;  %v341_v62 = vld [vmem:[%s1188_s5 + $0x28] sm:$0xff]  ;;  %p918_p9 = scmp.lt.s32.totalorder %s603_s4, %s603_s4 }
  0x1e   :  { %813 = vmatpush3.bf16.msra.mxu1 %v812_v14  ;;  %v857_v58 = vpack.c.bf16 %v337_v56, %v336_v55  ;;  %v860_v60 = vpack.c.bf16 %v339_v59, %v338_v57  ;;  %v340_v61 = vld [vmem:[%s1188_s5 + $0x20] sm:$0xff]  ;;  %v342_v2 = vld [vmem:[%s1188_s5 + $0x30] sm:$0xff]  ;;  %v343_v3 = vld [vmem:[%s1188_s5 + $0x38] sm:$0xff] }
  0x1f   :  { %697 = vmatmul.mubr.msk.f32.vlgmr.msra.gmra.mrb[0].mxu0 %vm68_vm1, %v56_v8  ;;  %814 = vmatprep.subr.bf16.mxu1 %v966_v0  ;;  %v863_v63 = vpack.c.bf16 %v341_v62, %v340_v61  ;;  %v866_v4 = vpack.c.bf16 %v343_v3, %v342_v2  ;;  %v426_v9 = vld [vmem:[%s1190_s7] sm:$0xff]  ;;  %v427_v10 = vld [vmem:[%s1190_s7 + $0x8] sm:$0xff] }
  0x20   :  { %766 = vmatprep.mubr.msk.f32.mxu0 %vm967_vm0, %v968_v1  ;;  %834 = vmatpush3.bf16.msra.mxu0 %v809_v12  ;;  %v869_v11 = vpack.c.bf16 %v427_v10, %v426_v9  ;;  %v514_v24 = vld [vmem:[%s1192_s9 + $0x8] sm:$0xff] }
  0x21   :  { %835 = vmatprep.subr.bf16.mxu0 %v966_v0 }
  0x22   :  { %816 = vmatpush3.bf16.msra.mxu1 %v815_v17 }
  0x23   :  { %817 = vmatprep.subr.bf16.mxu1 %v966_v0 }
  0x24   :  { %837 = vmatpush3.bf16.msra.mxu0 %v812_v14 }
  0x25   :  { %838 = vmatprep.subr.bf16.mxu0 %v966_v0 }
  0x26   :  { %819 = vmatpush3.bf16.msra.mxu1 %v818_v20 }
  0x27   :  { %820 = vmatprep.subr.bf16.mxu1 %v966_v0 }
  0x28   :  { %840 = vmatpush3.bf16.msra.mxu0 %v815_v17 }
  0x29   :  { %841 = vmatprep.subr.bf16.mxu0 %v966_v0 }
  0x2a   :  { %822 = vmatpush3.bf16.msra.mxu1 %v821_v23 }
  0x2b   :  { %823 = vmatprep.subr.bf16.mxu1 %v966_v0 }
  0x2c   :  { %843 = vmatpush3.bf16.msra.mxu0 %v818_v20  ;;  %v628_v20 = vld [vmem:[%s1189_s6] ss:$0 sm:$0xff] }
  0x2d   :  { %844 = vmatprep.subr.bf16.mxu0 %v966_v0 }
  0x2e   :  { %825 = vmatpush3.bf16.msra.mxu1 %v824_v26 }
  0x2f   :  { %826 = vmatprep.subr.bf16.mxu1 %v966_v0 }
  0x30   :  { %846 = vmatpush3.bf16.msra.mxu0 %v821_v23 }
  0x31   :  { %847 = vmatprep.subr.bf16.mxu0 %v966_v0 }
  0x32   :  { %828 = vmatpush3.bf16.msra.mxu1 %v827_v29 }
  0x33   :  { %829 = vmatprep.subr.bf16.mxu1 %v966_v0 }
  0x34   :  { %849 = vmatpush3.bf16.msra.mxu0 %v824_v26  ;;  %v630_v26 = vld [vmem:[%s1191_s8] ss:$0 sm:$0xff] }
  0x35   :  { %850 = vmatprep.subr.bf16.mxu0 %v966_v0 }
  0x36   :  { %831 = vmatpush3.bf16.msra.mxu1 %v830_v32 }
  0x37   :  { %856 = vmatprep.subr.bf16.mxu1 %v966_v0 }
  0x38   :  { %852 = vmatpush3.bf16.msra.mxu0 %v827_v29 }
  0x39   :  { %853 = vmatprep.subr.bf16.mxu0 %v966_v0 }
  0x3c   :  { %855 = vmatpush3.bf16.msra.mxu0 %v830_v32 }
  0x3d   :  { %868 = vmatprep.subr.bf16.mxu0 %v966_v0 }
  0xf2   :  { %v138_v34 = vpop.f32.mrb[0].mxu0 }
  0xf3   :  { %v139_v35 = vadd.f32 %v625_v33, %v138_v34  ;;  %v698_v36 = vpop.f32.mrb[1].mxu0 }
  0xf5   :  { %v143_v37 = vmul.f32 0.70710677, %v139_v35  ;;  %v142_v39 = vmul.f32 0.5, %v139_v35 }
  0xf7   :  { %883 = verf.f32 %v143_v37 }
 0x101   :  { %v884_v38 = vpop.eup %883 }
 0x102   :  { %v145_v40 = vadd.f32 1.0, %v884_v38 }
 0x104   :  { %v146_v41 = vmul.f32 %v145_v40, %v142_v39 }
 0x106   :  { %v165_v42 = vrot.slane %v146_v41, 4 }
 0x108   :  { %166 = vrot.lane.b32.xlu0 %v165_v42, %s969_s26 }
 0x17a   :  { %v167_v43 = vpop.permute.xlu0 %166 }
 0x17b   :  { %v170_v44 = vsel %vm169_vm2, %v146_v41, %v167_v43 }
 0x17c   :  { %732 = vmatmul.mubr.f32.vlgmr.msra.gmra.mrb[0].mxu1 %v170_v44 }
 0x17d   :  { %785 = vmatprep.mubr.msk.f32.mxu1 %vm967_vm0, %v968_v1  ;;  %858 = vmatpush3.bf16.msra.mxu1 %v857_v58 }
 0x17e   :  { %859 = vmatprep.subr.bf16.mxu1 %v966_v0 }
 0x181   :  { %861 = vmatpush3.bf16.msra.mxu1 %v860_v60 }
 0x182   :  { %862 = vmatprep.subr.bf16.mxu1 %v966_v0 }
 0x185   :  { %864 = vmatpush3.bf16.msra.mxu1 %v863_v63 }
 0x186   :  { %865 = vmatprep.subr.bf16.mxu1 %v966_v0 }
 0x189   :  { %867 = vmatpush3.bf16.msra.mxu1 %v866_v4 }
 0x24f   :  { %v243_v46 = vpop.f32.mrb[0].mxu1 }
 0x250   :  { %v244_v47 = vadd.f32 %v627_v45, %v243_v46  ;;  %v733_v48 = vpop.f32.mrb[1].mxu1 }
 0x252   :  { %v248_v49 = vmul.f32 0.70710677, %v244_v47  ;;  %v247_v51 = vmul.f32 0.5, %v244_v47 }
 0x254   :  { %885 = verf.f32 %v248_v49 }
 0x25e   :  { %v886_v50 = vpop.eup %885 }
 0x25f   :  { %v250_v52 = vadd.f32 1.0, %v886_v50 }
 0x261   :  { %v251_v53 = vmul.f32 %v250_v52, %v247_v51 }
 0x263   :  { %v252_v54 = vadd.f32 %v251_v53, %v170_v44 }
 0x265   :  { %767 = vmatmul.mubr.f32.vlgmr.msra.gmra.mrb[2].mxu0 %v252_v54 }
 0x266   :  { %792 = vmatprep.mubr.msk.f32.mxu0 %vm967_vm0, %v968_v1  ;;  %870 = vmatpush3.bf16.msra.mxu0 %v869_v11 }
 0x267   :  { %871 = vmatprep.subr.bf16.mxu0 %v966_v0  ;;  %v513_v0 = vld [vmem:[%s1192_s9] sm:$0xff]  ;;  %s913_s9 = scalar_lea.vmem %s603_s4, 128 }
 0x268   :  { %v872_v25 = vpack.c.bf16 %v514_v24, %v513_v0  ;;  %p914_p8 = scmp.ne.s32.totalorder %s603_s4, %s913_s9  ;;  %p919_p10 = scmp.lt.s32.totalorder %s913_s9, %s913_s9 }
 0x26a   :  { %p920_p11 = por %p919_p10, %p918_p9 }
 0x26c   :  { %p921_p12 = pnand %p920_p11, %p914_p8 }
 0x338   :  { %v319_v5 = vpop.f32.mrb[2].mxu0 }
 0x339   :  { %v320_v6 = vadd.f32 %v627_v45, %v319_v5  ;;  %v768_v7 = vpop.f32.mrb[3].mxu0 }
 0x33b   :  { %v324_v8 = vmul.f32 0.70710677, %v320_v6  ;;  %v323_v13 = vmul.f32 0.5, %v320_v6 }
 0x33d   :  { %887 = verf.f32 %v324_v8 }
 0x347   :  { %v888_v12 = vpop.eup %887 }
 0x348   :  { %v326_v14 = vadd.f32 1.0, %v888_v12 }
 0x34a   :  { %v327_v15 = vmul.f32 %v326_v14, %v323_v13 }
 0x34c   :  { %v328_v16 = vadd.f32 %v327_v15, %v252_v54 }
 0x34e   :  { %v330_v17 = vrot.slane %v328_v16, 4 }
 0x350   :  { %331 = vrot.lane.b32.xlu0 %v330_v17, %s969_s26 }
 0x3c2   :  { %v332_v18 = vpop.permute.xlu0 %331 }
 0x3c3   :  { %v335_v19 = vsel %vm334_vm3, %v328_v16, %v332_v18 }
 0x3c4   :  { %786 = vmatmul.mubr.msk.f32.vlgmr.msra.gmra.mrb[2].mxu1 %vm169_vm2, %v335_v19 }
 0x497   :  { %v420_v21 = vpop.f32.mrb[2].mxu1 }
 0x498   :  { %v421_v22 = vadd.f32 %v628_v20, %v420_v21  ;;  %v787_v23 = vpop.f32.mrb[3].mxu1 }
 0x49a   :  { %793 = vmatmul.mubr.msk.f32.vlgmr.msra.gmra.mrb[4].mxu0 %vm424_vm4, %v421_v22  ;;  %425 = vst.msk [vmem:[#allocation5] sm:$0xff] %vm424_vm4, %v421_v22 }
 0x49b   :  { %799 = vmatprep.mubr.msk.f32.mxu0 %vm967_vm0, %v968_v1  ;;  %873 = vmatpush3.bf16.msra.mxu0 %v872_v25 }
 0x56d   :  { %v504_v27 = vpop.f32.mrb[4].mxu0 }
 0x56e   :  { %v505_v28 = vadd.f32 %v630_v26, %v504_v27  ;;  %v794_v29 = vpop.f32.mrb[5].mxu0 }
 0x570   :  { %v509_v30 = vmul.f32 0.70710677, %v505_v28  ;;  %v508_v31 = vmul.f32 0.5, %v505_v28 }
 0x572   :  { %889 = verf.f32 %v509_v30 }
 0x57c   :  { %v890_v1 = vpop.eup %889 }
 0x57d   :  { %v511_v32 = vadd.f32 1.0, %v890_v1 }
 0x57f   :  { %v512_v33 = vmul.f32 %v511_v32, %v508_v31 }
 0x581   :  { %800 = vmatmul.mubr.msk.f32.vlgmr.msra.gmra.mrb[6].mxu0 %vm424_vm4, %v512_v33 }
 0x582   :  { %924 = shalt.err (!%p921_p12)
}
 0x583   :  { %s925_s14 = scalar_lea.hbm %s1194_s11, 128 }
 0x584   :  { %p926_p13 = scmp.ne.s32.totalorder %s1194_s11, %s925_s14  ;;  %p929_p0 = scmp.lt.u32.totalorder %s925_s14, %s1194_s11 }
 0x586   :  { %p931_p1 = pnand %p929_p0, %p926_p13 }
 0x588   :  { %934 = shalt.err (!%p931_p1)
}
 0x589   :  { %605 = dma.vmem_to_hbm [thread:$0]  %s603_s4, 128, %s1194_s11, [#allocation4]   ;;  %v632_v34 = vld [vmem:[%s1193_s10] ss:$0 sm:$0xff] }
 0x58a   :  { %s971_s22 = smov [#allocation6]  }
 0x58b   :  { %s612_s23 = sshll.u32 %s971_s22, 4  ;;  %s613_s23 = int_to_ptr.vmem [resolvable:$true] %s612_s23 }
 0x58c   :  { %s935_s24 = scalar_lea.vmem %s613_s23, 128  ;;  %p940_p3 = scmp.lt.s32.totalorder %s613_s23, %s613_s23 }
 0x58d   :  { %p936_p2 = scmp.ne.s32.totalorder %s613_s23, %s935_s24  ;;  %p941_p4 = scmp.lt.s32.totalorder %s935_s24, %s935_s24 }
 0x58f   :  { %p942_p5 = por %p941_p4, %p940_p3 }
 0x591   :  { %p943_p6 = pnand %p942_p5, %p936_p2 }
 0x654   :  { %v591_v35 = vpop.f32.mrb[6].mxu0 }
 0x655   :  { %v592_v36 = vadd.f32 %v632_v34, %v591_v35  ;;  %v801_v37 = vpop.f32.mrb[7].mxu0 }
 0x657   :  { %595 = vst.msk [vmem:[#allocation6] sm:$0xff] %vm424_vm4, %v592_v36 }
 0x658   :  { %946 = shalt.err (!%p943_p6)
}
 0x659   :  { %s947_s0 = scalar_lea.hbm %s1195_s12, 128 }
 0x65a   :  { %p948_p7 = scmp.ne.s32.totalorder %s1195_s12, %s947_s0  ;;  %p951_p8 = scmp.lt.u32.totalorder %s947_s0, %s1195_s12 }
 0x65c   :  { %p953_p9 = pnand %p951_p8, %p948_p7 }
 0x65e   :  { %956 = shalt.err (!%p953_p9)
}
 0x65f   :  { %615 = dma.vmem_to_hbm [thread:$0]  %s613_s23, 128, %s1195_s12, [#allocation7]  }
 0x660   :  { %959 = dma.done.wait [#allocation4], 128  }
 0x661   :  { %960 = vsyncadd [#allocation4], 4294967168 }
 0x662   :  { %961 = dma.done.wait [#allocation7], 128  }
 0x663   :  { %962 = vsyncadd [#allocation7], 4294967168 }
 0x664   :  { %622 = vsyncpa [#allocation3], 1 }
 0x665   :  { %623 = vsyncpa [#allocation4], 1 }
 0x666   :  { %624 = vsyncpa [#allocation7], 1 }

</bundles_post_ra>
